<compile_context>
chip_gen: v6e
topology: v6e:2x2x1
jax: 0.10.0
libtpu: 0.0.40
codegen_flags: <defaults>
</compile_context>

<pallas_src>
import jax
import jax.numpy as jnp
from jax.experimental import pallas as pl
from jax.experimental.pallas import tpu as pltpu


_LANE_CHOICES = (512, 256, 128)          # lane-dense widths (multiples of 128)
_TARGET_BLOCK_BYTES = 4 * 1024 * 1024    # ~4 MiB per block
_VMEM_LIMIT_BYTES = 40 * 1024 * 1024     # headroom for 2 bufs x (in + out)


def _swish_kernel(x_ref, o_ref):
    x = x_ref[...]
    # swish(x) = x * sigmoid(x). f32 is HBM-bound on all generations, so the
    # exact sigmoid is free.
    # TODO(synk): if bf16 I/O on v7x makes EUP the binding slot, switch to
    # exp(-x) + pl.reciprocal(..., approx=True) to halve EUP pushes/element.
    o_ref[...] = x * jax.nn.sigmoid(x)


def _round_up(a: int, m: int) -> int:
    return ((a + m - 1) // m) * m


def _swish_2d(x2d: jnp.ndarray) -> jnp.ndarray:
    """Run the swish kernel over a lane-dense (rows, lanes) slab."""
    rows, lanes = x2d.shape
    itemsize = jnp.dtype(x2d.dtype).itemsize
    # Sublane packing multiple: 8 for 32-bit, 16 for 16-bit, 32 for 8-bit.
    sub = max(8, 32 // itemsize)

    # Block rows sized so each block is ~4 MiB regardless of lane width/dtype.
    max_rows = max(sub, (_TARGET_BLOCK_BYTES // (lanes * itemsize)) // sub * sub)

    if rows <= sub:
        tile_r = rows  # full row extent, single block (allowed even if < 8)
    elif rows <= max_rows:
        # Split into >=2 blocks so both v7x TensorCores can be busy. The last
        # block may be partial; safe for elementwise (OOB stores dropped).
        tile_r = min(rows, _round_up(pl.cdiv(rows, 2), sub))
    else:
        tile_r = max_rows

    grid = (pl.cdiv(rows, tile_r),)
    n = rows * lanes
    cost = pl.CostEstimate(
        flops=2 * n,
        transcendentals=n,
        bytes_accessed=2 * n * itemsize,
    )

    return pl.pallas_call(
        _swish_kernel,
        out_shape=jax.ShapeDtypeStruct((rows, lanes), x2d.dtype),
        grid_spec=pl.GridSpec(
            grid=grid,
            in_specs=[pl.BlockSpec((tile_r, lanes), lambda i: (i, 0))],
            out_specs=pl.BlockSpec((tile_r, lanes), lambda i: (i, 0)),
        ),
        compiler_params=pltpu.CompilerParams(
            # TODO(synk): verify in xprof that "parallel" shards the row axis
            # across both v7x TCs; if not, switch to pltpu.CORE_PARALLEL.
            dimension_semantics=("parallel",),
            vmem_limit_bytes=_VMEM_LIMIT_BYTES,
        ),
        cost_estimate=cost,
    )(x2d)


def swish(x: jnp.ndarray) -> jnp.ndarray:
    """Elementwise swish on an arbitrary-shaped array (e.g. NCHW)."""
    # TODO(synk): add input_output_aliases={0: 0} when the caller donates x.
    orig_shape = x.shape
    n = x.size

    # Fast path: widest lane count that divides n exactly -> single free
    # reshape NCHW -> (rows, lanes); no pad, no slice, no concat.
    for lanes in _LANE_CHOICES:
        if n >= lanes and n % lanes == 0:
            out2d = _swish_2d(x.reshape(n // lanes, lanes))
            return out2d.reshape(orig_shape)

    # Ragged size: run the kernel only on the 128-aligned bulk; compute the
    # tiny (<128-element) tail with plain fused jnp. No full-tensor pad/slice
    # passes over HBM.
    lanes = 128
    n_bulk = (n // lanes) * lanes
    flat = x.reshape(-1)
    if n_bulk == 0:
        # Tiny or empty input: not worth a kernel launch.
        return (flat * jax.nn.sigmoid(flat)).reshape(orig_shape)
    bulk = flat[:n_bulk].reshape(n_bulk // lanes, lanes)
    tail = flat[n_bulk:]
    out_bulk = _swish_2d(bulk).reshape(-1)
    out_tail = tail * jax.nn.sigmoid(tail)
    return jnp.concatenate([out_bulk, out_tail]).reshape(orig_shape)


if __name__ == "__main__":
    key = jax.random.PRNGKey(0)

    # NCHW-style input consistent with the module's usage in FBCNet.
    x = jax.random.normal(key, (2, 4, 16, 16), dtype=jnp.float32)
    out = jax.block_until_ready(swish(x))
    ref = x * jax.nn.sigmoid(x)
    assert out.shape == x.shape
    assert out.dtype == x.dtype
    assert jnp.allclose(out, ref, atol=1e-6, rtol=1e-6)

    # Exercise the ragged (bulk + jnp tail) path as well: 510 elements.
    x2 = jax.random.normal(jax.random.PRNGKey(1), (1, 3, 10, 17), dtype=jnp.float32)
    out2 = jax.block_until_ready(swish(x2))
    ref2 = x2 * jax.nn.sigmoid(x2)
    assert out2.shape == x2.shape
    assert jnp.allclose(out2, ref2, atol=1e-6, rtol=1e-6)

    print("KERNEL_OK")
</pallas_src>

<mosaic_0001>
module attributes {stable_mosaic.version = 11 : i64} {
  func.func @_swish_kernel(%arg0: i32, %arg1: memref<4x512xf32, #tpu.memory_space<vmem>>, %arg2: memref<4x512xf32, #tpu.memory_space<vmem>>) attributes {dimension_semantics = [#tpu.dimension_semantics<parallel>], iteration_bounds = array<i64: 1>, scalar_prefetch = 0 : i64, scratch_operands = 0 : i64, tpu.core_type = #tpu.core_type<tc>, window_params = [{transform_indices = @transform_0, window_bounds = array<i64: 4, 512>}, {transform_indices = @transform_1, window_bounds = array<i64: 4, 512>}]} {
    %c0 = arith.constant 0 : index
    %c0_0 = arith.constant 0 : index
    %0 = vector.load %arg1[%c0, %c0_0] : memref<4x512xf32, #tpu.memory_space<vmem>>, vector<4x512xf32>
    %1 = arith.negf %0 : vector<4x512xf32>
    %2 = math.exp %1 : vector<4x512xf32>
    %cst = arith.constant 1.000000e+00 : f32
    %3 = vector.broadcast %cst : f32 to vector<4x512xf32>
    %4 = arith.addf %3, %2 : vector<4x512xf32>
    %5 = arith.divf %3, %4 : vector<4x512xf32>
    %6 = arith.mulf %0, %5 : vector<4x512xf32>
    %c0_1 = arith.constant 0 : index
    %c0_2 = arith.constant 0 : index
    %7 = vector.load %arg2[%c0_1, %c0_2] : memref<4x512xf32, #tpu.memory_space<vmem>>, vector<4x512xf32>
    tpu.vector_store %arg2[%c0_1, %c0_2], %6 {strides = array<i32>} : memref<4x512xf32, #tpu.memory_space<vmem>>, vector<4x512xf32>,
    return
  }
  func.func @transform_0(%arg0: i32) -> (i32, i32) {
    %c0_i32 = arith.constant 0 : i32
    %c0_i32_0 = arith.constant 0 : i32
    return %arg0, %c0_i32 : i32, i32
  }
  func.func @transform_1(%arg0: i32) -> (i32, i32) {
    %c0_i32 = arith.constant 0 : i32
    %c0_i32_0 = arith.constant 0 : i32
    return %arg0, %c0_i32 : i32, i32
  }
}

</mosaic_0001>

<bundles_post_ra>
// kernel: tpu_custom_call.1
= control target key start
LH: loop header
LB: loop body
LE: loop exit
PB: predicated region body
PF: predicated region fallthrough
CT: control target
= control target key end

     0   :  { %6 = vsyncpa [#allocation3], 0  ;;  %s128_s0 = inlined_call_operand.hbm [shape: f32[4,512], index: 0, kind: input, shape index: {}]   ;;  %s129_s1 = inlined_call_operand.hbm [shape: f32[4,512], index: 1, kind: output, shape index: {}]  }
   0x1   :  { %7 = vsyncpa [#allocation4], 0  ;;  %s110_s6 = smov [#allocation2]  }
   0x2   :  { %s14_s7 = sshll.u32 %s110_s6, 4  ;;  %s15_s7 = int_to_ptr.vmem [resolvable:$true] %s14_s7 }
   0x3   :  { %s74_s8 = scalar_lea.vmem %s15_s7, 256  ;;  %p79_p1 = scmp.lt.s32.totalorder %s15_s7, %s15_s7 }
   0x4   :  { %p75_p0 = scmp.ne.s32.totalorder %s15_s7, %s74_s8  ;;  %p80_p2 = scmp.lt.s32.totalorder %s74_s8, %s74_s8 }
   0x6   :  { %p81_p3 = por %p80_p2, %p79_p1 }
   0x8   :  { %p82_p4 = pnand %p81_p3, %p75_p0 }
   0xa   :  { %85 = shalt.err (!%p82_p4)
}
   0xb   :  { %17 = dma.hbm_to_vmem [thread:$0]  %s128_s0, 256, %s15_s7, [#allocation3]  }
   0xc   :  { %106 = dma.done.wait [#allocation3], 256  }
   0xd   :  { %107 = vsyncadd [#allocation3], 4294967040  ;;  %v21_v0 = vld [vmem:[#allocation2] sm:$0xff]  ;;  %v22_v1 = vld [vmem:[#allocation2 + $0x8] sm:$0xff]  ;;  %s111_s11 = smov [#allocation5]  }
   0xe   :  { %v54_v2 = vmul.f32 -1.442695, %v21_v0  ;;  %v55_v3 = vmul.f32 -1.442695, %v22_v1  ;;  %s45_s12 = sshll.u32 %s111_s11, 4  ;;  %s46_s12 = int_to_ptr.vmem [resolvable:$true] %s45_s12 }
   0xf   :  { %s86_s0 = scalar_lea.vmem %s46_s12, 256  ;;  %p91_p6 = scmp.lt.s32.totalorder %s46_s12, %s46_s12 }
  0x10   :  { %58 = vpow2.f32 %v54_v2  ;;  %p87_p5 = scmp.ne.s32.totalorder %s46_s12, %s86_s0  ;;  %p92_p7 = scmp.lt.s32.totalorder %s86_s0, %s86_s0 }
  0x11   :  { %60 = vpow2.f32 %v55_v3 }
  0x12   :  { %p93_p8 = por %p92_p7, %p91_p6 }
  0x14   :  { %p94_p9 = pnand %p93_p8, %p87_p5 }
  0x1d   :  { %v59_v4 = vpop.eup %58 }
  0x1e   :  { %v61_v5 = vpop.eup %60  ;;  %v29_v6 = vadd.f32 1.0, %v59_v4 }
  0x1f   :  { %v30_v7 = vadd.f32 1.0, %v61_v5 }
  0x20   :  { %62 = vrcp.f32 %v29_v6 }
  0x21   :  { %64 = vrcp.f32 %v30_v7 }
  0x2d   :  { %v63_v8 = vpop.eup %62 }
  0x2e   :  { %v65_v9 = vpop.eup %64  ;;  %v35_v10 = vmul.f32 %v63_v8, %v21_v0 }
  0x2f   :  { %v36_v11 = vmul.f32 %v65_v9, %v22_v1 }
  0x30   :  { %37 = vst [vmem:[#allocation5] sm:$0xff] %v35_v10 }
  0x31   :  { %38 = vst [vmem:[#allocation5 + $0x8] sm:$0xff] %v36_v11 }
  0x32   :  { %97 = shalt.err (!%p94_p9)
}
  0x33   :  { %48 = dma.vmem_to_hbm [thread:$0]  %s46_s12, 256, %s129_s1, [#allocation4]  }
  0x34   :  { %108 = dma.done.wait [#allocation4], 256  }
  0x35   :  { %109 = vsyncadd [#allocation4], 4294967040 }
  0x36   :  { %52 = vsyncpa [#allocation3], 1 }
  0x37   :  { %53 = vsyncpa [#allocation4], 1 }

</bundles_post_ra>
